<compile_context>
chip_gen: v7x
topology: tpu7x:2x2x1
jax: 0.10.0
libtpu: 0.0.40
codegen_flags: <defaults>
</compile_context>

<pallas_src>
import jax
import jax.numpy as jnp
from jax.experimental import pallas as pl
from jax.experimental.pallas import tpu as pltpu


def _neural_optimizer_kernel(g_ref, p_ref, w12_ref, w3_ref, b_ref, out_ref):
    """Fused forward for one (TM, D) block of rows.

    g_ref   : (TM, D)      bf16  flattened grad rows
    p_ref   : (TM, D)      bf16  flattened param rows
    w12_ref : (2D, 2H)     bf16  [W1 | W2] fused gate / delta-hidden weights (VMEM-resident)
    w3_ref  : (H, D)       bf16  delta output weights (VMEM-resident)
    b_ref   : (1, 2H + D)  f32   [b1 | b2 | b3] fused biases
    out_ref : (TM, D)      f32
    """
    H = w3_ref.shape[0]

    # In-vreg lane concat at a 128-multiple boundary (D is a multiple of 128) — free,
    # no VMEM scratch round-trip before the first MXU push.
    inp = jnp.concatenate([g_ref[...], p_ref[...]], axis=-1)          # (TM, 2D) bf16

    # Fused layer 1: one MXU push producing [gate_lin | hidden_lin] of width 2H,
    # f32 accumulation, biases added in f32.
    lin = jnp.dot(inp, w12_ref[...], preferred_element_type=jnp.float32)
    lin = lin + b_ref[:, : 2 * H]                                     # (TM, 2H) f32

    gate_lin = lin[:, :H]
    hidden = jnp.maximum(lin[:, H:], 0.0)

    # Exact sigmoid via one EUP op: sigmoid(x) = 0.5 * (tanh(x/2) + 1).
    gate = 0.5 * (jnp.tanh(0.5 * gate_lin) + 1.0)

    # delta = relu(...) @ W3 + b3   (second / last MXU push)
    delta = jnp.dot(hidden.astype(jnp.bfloat16), w3_ref[...],
                    preferred_element_type=jnp.float32) + b_ref[:, 2 * H:]

    # D is a multiple of 128 -> full-lane (unmasked) stores.
    out_ref[...] = gate * delta


def _round_up(x, m):
    return ((x + m - 1) // m) * m


def neural_optimizer_forward_batched(grads, params, packed_weights):
    """Apply the learned rule to M rows of size D in one pallas_call (grid over M)."""
    w12, w3, b_all = packed_weights
    H, D = w3.shape
    assert H == D, "torch gate*delta broadcast requires hidden_dim == param_dim"
    assert D % 128 == 0 and H % 128 == 0, "D/H must be multiples of 128 (lane width)"
    M = grads.shape[0]
    assert params.shape == grads.shape == (M, D)

    # Row tile: 128 (MXU-native, also right for v5e) when M is large, else one bf16
    # sublane pack (16). Pad M up so every block is full.
    TM = 128 if M >= 128 else 16
    m_padded = _round_up(M, TM)

    g = grads.astype(jnp.bfloat16)
    p = params.astype(jnp.bfloat16)
    if m_padded != M:
        g = jnp.pad(g, ((0, m_padded - M), (0, 0)))
        p = jnp.pad(p, ((0, m_padded - M), (0, 0)))

    cost = pl.CostEstimate(
        flops=2 * m_padded * (2 * D * 2 * H + H * D),
        transcendentals=m_padded * H,
        bytes_accessed=(w12.size * 2 + w3.size * 2 + b_all.size * 4
                        + 2 * m_padded * D * 2 + m_padded * D * 4),
    )

    out = pl.pallas_call(
        _neural_optimizer_kernel,
        out_shape=jax.ShapeDtypeStruct((m_padded, D), jnp.float32),
        grid=(m_padded // TM,),
        in_specs=[
            pl.BlockSpec((TM, D), lambda i: (i, 0)),          # grad rows
            pl.BlockSpec((TM, D), lambda i: (i, 0)),          # param rows
            pl.BlockSpec((2 * D, 2 * H), lambda i: (0, 0)),   # fused W1|W2 (resident)
            pl.BlockSpec((H, D), lambda i: (0, 0)),           # W3 (resident)
            pl.BlockSpec((1, 2 * H + D), lambda i: (0, 0)),   # fused biases (resident)
        ],
        out_specs=pl.BlockSpec((TM, D), lambda i: (i, 0)),
        compiler_params=pltpu.CompilerParams(
            dimension_semantics=("parallel",)),               # v7x: split rows across 2 TCs
        cost_estimate=cost,
    )(g, p, w12, w3, b_all)
    return out[:M]


def neural_optimizer_forward(grad, param, packed_weights):
    """Single (grad, param) pair — matches the PyTorch module's forward()."""
    g = grad.reshape(1, -1)
    p = param.reshape(1, -1)
    out = neural_optimizer_forward_batched(g, p, packed_weights)
    return out[0]  # (D,)


def init_weights(key, param_dim, hidden_dim):
    """Deterministic synthetic init; shapes follow nn.Linear but stored (in, out). f32."""
    k1, k2, k3, k4, k5, k6 = jax.random.split(key, 6)
    in_dim = 2 * param_dim
    s1 = 1.0 / jnp.sqrt(in_dim)
    s3 = 1.0 / jnp.sqrt(hidden_dim)
    w1 = jax.random.uniform(k1, (in_dim, hidden_dim), jnp.float32, -s1, s1)
    b1 = jax.random.uniform(k2, (1, hidden_dim), jnp.float32, -s1, s1)
    w2 = jax.random.uniform(k3, (in_dim, hidden_dim), jnp.float32, -s1, s1)
    b2 = jax.random.uniform(k4, (1, hidden_dim), jnp.float32, -s1, s1)
    w3 = jax.random.uniform(k5, (hidden_dim, param_dim), jnp.float32, -s3, s3)
    b3 = jax.random.uniform(k6, (1, param_dim), jnp.float32, -s3, s3)
    return (w1, b1, w2, b2, w3, b3)


def pack_weights(weights):
    """One-time packing: fuse W1|W2 -> (2D, 2H) bf16, W3 -> bf16, b1|b2|b3 -> one f32 row."""
    w1, b1, w2, b2, w3, b3 = weights
    assert w3.shape[0] == w3.shape[1], "hidden_dim must equal param_dim (torch broadcast)"
    w12 = jnp.concatenate([w1, w2], axis=1).astype(jnp.bfloat16)        # (2D, 2H)
    w3b = w3.astype(jnp.bfloat16)                                       # (H, D)
    b_all = jnp.concatenate([b1, b2, b3], axis=1).astype(jnp.float32)   # (1, 2H + D)
    return w12, w3b, b_all


def reference_forward(grad, param, weights):
    """Pure-JAX f32 reference of the PyTorch module (single pair)."""
    w1, b1, w2, b2, w3, b3 = weights
    inp = jnp.concatenate([grad.reshape(-1), param.reshape(-1)])
    gate = jax.nn.sigmoid(inp @ w1 + b1[0])
    delta = jnp.maximum(inp @ w2 + b2[0], 0.0) @ w3 + b3[0]
    return gate * delta


def reference_forward_batched(grads, params, weights):
    """Pure-JAX f32 reference, applied row-wise."""
    w1, b1, w2, b2, w3, b3 = weights
    inp = jnp.concatenate([grads, params], axis=-1)                      # (M, 2D)
    gate = jax.nn.sigmoid(inp @ w1 + b1)
    delta = jnp.maximum(inp @ w2 + b2, 0.0) @ w3 + b3
    return gate * delta


if __name__ == "__main__":
    # NOTE: PyTorch's `gate * delta` ((hidden_dim,) * (param_dim,)) only broadcasts
    # when hidden_dim == param_dim, so we pick param_dim == hidden_dim == 128.
    PARAM_DIM = 128
    HIDDEN_DIM = 128

    key = jax.random.PRNGKey(0)
    kw, kg, kp, kbg, kbp = jax.random.split(key, 5)
    weights = init_weights(kw, PARAM_DIM, HIDDEN_DIM)
    packed = pack_weights(weights)   # one-time bf16 fusion, reused across calls

    # --- Single (grad, param) pair: exactly the PyTorch module's forward ---
    grad = jax.random.normal(kg, (8, 16), jnp.float32)    # flattens to PARAM_DIM
    param = jax.random.normal(kp, (8, 16), jnp.float32)
    out = jax.block_until_ready(neural_optimizer_forward(grad, param, packed))
    ref = reference_forward(grad, param, weights)
    assert out.shape == (PARAM_DIM,)
    # bf16 MXU inputs/weights -> loosened tolerance vs pure-f32 reference.
    assert jnp.allclose(out, ref, atol=2e-2, rtol=2e-2), "single-pair mismatch vs reference"

    # --- Batched path: many rows in one call (grid over M, weights resident) ---
    M = 40
    grads_b = jax.random.normal(kbg, (M, PARAM_DIM), jnp.float32)
    params_b = jax.random.normal(kbp, (M, PARAM_DIM), jnp.float32)
    out_b = jax.block_until_ready(
        neural_optimizer_forward_batched(grads_b, params_b, packed))
    ref_b = reference_forward_batched(grads_b, params_b, weights)
    assert out_b.shape == (M, PARAM_DIM)
    assert jnp.allclose(out_b, ref_b, atol=2e-2, rtol=2e-2), "batched mismatch vs reference"

    print("KERNEL_OK")
</pallas_src>

<mosaic_0001>
module attributes {stable_mosaic.version = 11 : i64} {
  func.func @_neural_optimizer_kernel(%arg0: i32, %arg1: memref<16x128xbf16, #tpu.memory_space<vmem>>, %arg2: memref<16x128xbf16, #tpu.memory_space<vmem>>, %arg3: memref<256x256xbf16, #tpu.memory_space<vmem>>, %arg4: memref<128x128xbf16, #tpu.memory_space<vmem>>, %arg5: memref<1x384xf32, #tpu.memory_space<vmem>>, %arg6: memref<16x128xf32, #tpu.memory_space<vmem>>) attributes {dimension_semantics = [#tpu.dimension_semantics<parallel>], iteration_bounds = array<i64: 1>, scalar_prefetch = 0 : i64, scratch_operands = 0 : i64, tpu.core_type = #tpu.core_type<tc>, window_params = [{transform_indices = @transform_0, window_bounds = array<i64: 16, 128>}, {transform_indices = @transform_1, window_bounds = array<i64: 16, 128>}, {pipeline_mode = #tpu.pipeline_mode<synchronous>, transform_indices = @transform_2, window_bounds = array<i64: 256, 256>}, {pipeline_mode = #tpu.pipeline_mode<synchronous>, transform_indices = @transform_3, window_bounds = array<i64: 128, 128>}, {pipeline_mode = #tpu.pipeline_mode<synchronous>, transform_indices = @transform_4, window_bounds = array<i64: 1, 384>}, {transform_indices = @transform_5, window_bounds = array<i64: 16, 128>}]} {
    %c0 = arith.constant 0 : index
    %c0_0 = arith.constant 0 : index
    %0 = vector.load %arg1[%c0, %c0_0] : memref<16x128xbf16, #tpu.memory_space<vmem>>, vector<16x128xbf16>
    %c0_1 = arith.constant 0 : index
    %c0_2 = arith.constant 0 : index
    %1 = vector.load %arg2[%c0_1, %c0_2] : memref<16x128xbf16, #tpu.memory_space<vmem>>, vector<16x128xbf16>
    %2 = tpu.concatenate %0, %1 in 1 : vector<16x128xbf16>, vector<16x128xbf16> -> vector<16x256xbf16>
    %c0_3 = arith.constant 0 : index
    %c0_4 = arith.constant 0 : index
    %3 = vector.load %arg3[%c0_3, %c0_4] : memref<256x256xbf16, #tpu.memory_space<vmem>>, vector<256x256xbf16>
    %cst = arith.constant dense<0.000000e+00> : vector<16x256xf32>
    %4 = tpu.matmul %2, %3, %cst {dimension_numbers = #tpu.dot_dimension_numbers<[1], [0], [0], [1], [0, 0, 1, 1], [], []>} : vector<16x256xbf16>, vector<256x256xbf16>, vector<16x256xf32> -> vector<16x256xf32>
    %c0_5 = arith.constant 0 : index
    %c0_6 = arith.constant 0 : index
    %5 = vector.load %arg5[%c0_5, %c0_6] : memref<1x384xf32, #tpu.memory_space<vmem>>, vector<1x256xf32>
    %6 = vector.broadcast %5 : vector<1x256xf32> to vector<16x256xf32>
    %7 = arith.addf %4, %6 : vector<16x256xf32>
    %8 = vector.extract_strided_slice %7 {offsets = [0, 0], sizes = [16, 128], strides = [1, 1]} : vector<16x256xf32> to vector<16x128xf32>
    %9 = vector.extract_strided_slice %7 {offsets = [0, 128], sizes = [16, 128], strides = [1, 1]} : vector<16x256xf32> to vector<16x128xf32>
    %cst_7 = arith.constant 0.000000e+00 : f32
    %10 = vector.broadcast %cst_7 : f32 to vector<16x128xf32>
    %11 = arith.maximumf %9, %10 : vector<16x128xf32>
    %cst_8 = arith.constant 5.000000e-01 : f32
    %12 = vector.broadcast %cst_8 : f32 to vector<16x128xf32>
    %13 = arith.mulf %12, %8 : vector<16x128xf32>
    %14 = math.tanh %13 : vector<16x128xf32>
    %cst_9 = arith.constant 1.000000e+00 : f32
    %15 = vector.broadcast %cst_9 : f32 to vector<16x128xf32>
    %16 = arith.addf %14, %15 : vector<16x128xf32>
    %cst_10 = arith.constant 5.000000e-01 : f32
    %17 = vector.broadcast %cst_10 : f32 to vector<16x128xf32>
    %18 = arith.mulf %17, %16 : vector<16x128xf32>
    %19 = arith.truncf %11 : vector<16x128xf32> to vector<16x128xbf16>
    %c0_11 = arith.constant 0 : index
    %c0_12 = arith.constant 0 : index
    %20 = vector.load %arg4[%c0_11, %c0_12] : memref<128x128xbf16, #tpu.memory_space<vmem>>, vector<128x128xbf16>
    %cst_13 = arith.constant dense<0.000000e+00> : vector<16x128xf32>
    %21 = tpu.matmul %19, %20, %cst_13 {dimension_numbers = #tpu.dot_dimension_numbers<[1], [0], [0], [1], [0, 0, 1, 1], [], []>} : vector<16x128xbf16>, vector<128x128xbf16>, vector<16x128xf32> -> vector<16x128xf32>
    %c0_14 = arith.constant 0 : index
    %c256 = arith.constant 256 : index
    %22 = vector.load %arg5[%c0_14, %c256] : memref<1x384xf32, #tpu.memory_space<vmem>>, vector<1x128xf32>
    %23 = vector.broadcast %22 : vector<1x128xf32> to vector<16x128xf32>
    %24 = arith.addf %21, %23 : vector<16x128xf32>
    %25 = arith.mulf %18, %24 : vector<16x128xf32>
    %c0_15 = arith.constant 0 : index
    %c0_16 = arith.constant 0 : index
    %26 = vector.load %arg6[%c0_15, %c0_16] : memref<16x128xf32, #tpu.memory_space<vmem>>, vector<16x128xf32>
    tpu.vector_store %arg6[%c0_15, %c0_16], %25 {strides = array<i32>} : memref<16x128xf32, #tpu.memory_space<vmem>>, vector<16x128xf32>,
    return
  }
  func.func @transform_0(%arg0: i32) -> (i32, i32) {
    %c0_i32 = arith.constant 0 : i32
    %c0_i32_0 = arith.constant 0 : i32
    return %arg0, %c0_i32 : i32, i32
  }
  func.func @transform_1(%arg0: i32) -> (i32, i32) {
    %c0_i32 = arith.constant 0 : i32
    %c0_i32_0 = arith.constant 0 : i32
    return %arg0, %c0_i32 : i32, i32
  }
  func.func @transform_2(%arg0: i32) -> (i32, i32) {
    %c0_i32 = arith.constant 0 : i32
    %c0_i32_0 = arith.constant 0 : i32
    %c0_i32_1 = arith.constant 0 : i32
    return %c0_i32, %c0_i32_0 : i32, i32
  }
  func.func @transform_3(%arg0: i32) -> (i32, i32) {
    %c0_i32 = arith.constant 0 : i32
    %c0_i32_0 = arith.constant 0 : i32
    %c0_i32_1 = arith.constant 0 : i32
    return %c0_i32, %c0_i32_0 : i32, i32
  }
  func.func @transform_4(%arg0: i32) -> (i32, i32) {
    %c0_i32 = arith.constant 0 : i32
    %c0_i32_0 = arith.constant 0 : i32
    %c0_i32_1 = arith.constant 0 : i32
    return %c0_i32, %c0_i32_0 : i32, i32
  }
  func.func @transform_5(%arg0: i32) -> (i32, i32) {
    %c0_i32 = arith.constant 0 : i32
    %c0_i32_0 = arith.constant 0 : i32
    return %arg0, %c0_i32 : i32, i32
  }
}

</mosaic_0001>

<bundles_post_ra>
// kernel: tpu_custom_call.1
= control target key start
LH: loop header
LB: loop body
LE: loop exit
PB: predicated region body
PF: predicated region fallthrough
CT: control target
= control target key end

     0   :  { %10 = vsyncpa [#allocation3], 0  ;;  %s887_s0 = inlined_call_operand.hbm [shape: bf16[16,128], index: 0, kind: input, shape index: {}]   ;;  %s888_s1 = inlined_call_operand.hbm [shape: bf16[16,128], index: 1, kind: input, shape index: {}]   ;;  %s889_s2 = inlined_call_operand.hbm [shape: bf16[256,256], index: 2, kind: input, shape index: {}]   ;;  %s890_s3 = inlined_call_operand.hbm [shape: bf16[128,128], index: 3, kind: input, shape index: {}]   ;;  %s891_s4 = inlined_call_operand.vmem [shape: f32[1,384], index: 4, kind: input, shape index: {}]   ;;  %s892_s5 = inlined_call_operand.hbm [shape: f32[16,128], index: 5, kind: output, shape index: {}]  }
   0x1   :  { %11 = vsyncpa [#allocation6], 0 }
   0x2   :  { %12 = vsyncpa [#allocation9], 0 }
   0x3   :  { %13 = vsyncpa [#allocation4], 0  ;;  %s749_s18 = smov [#allocation5]   ;;  %s750_s20 = smov [#allocation2]  }
   0x4   :  { %s31_s19 = sshll.u32 %s749_s18, 4  ;;  %s19_s21 = sshll.u32 %s750_s20, 4  ;;  %s32_s19 = int_to_ptr.vmem [resolvable:$true] %s31_s19  ;;  %s790_s21 = int_to_ptr.vmem [resolvable:$true] %s19_s21 }
   0x5   :  { %s631_s24 = scalar_lea.hbm %s888_s1, 128 }
   0x6   :  { %p632_p0 = scmp.ne.s32.totalorder %s888_s1, %s631_s24  ;;  %p635_p1 = scmp.lt.u32.totalorder %s631_s24, %s888_s1 }
   0x8   :  { %p637_p2 = pnand %p635_p1, %p632_p0 }
   0xa   :  { %640 = shalt.err (!%p637_p2)
}
   0xb   :  { %s641_s29 = scalar_lea.vmem %s32_s19, 128  ;;  %p646_p4 = scmp.lt.s32.totalorder %s32_s19, %s32_s19 }
   0xc   :  { %p642_p3 = scmp.ne.s32.totalorder %s32_s19, %s641_s29  ;;  %p647_p5 = scmp.lt.s32.totalorder %s641_s29, %s641_s29 }
   0xe   :  { %p648_p6 = por %p647_p5, %p646_p4 }
  0x10   :  { %p649_p7 = pnand %p648_p6, %p642_p3 }
  0x12   :  { %652 = shalt.err (!%p649_p7)
}
  0x13   :  { %s751_s30 = smov 64   ;;  %s752_s6 = smov 4  }
  0x14   :  { %37 = dma.hbm_to_vmem [thread:$0]  %s888_s1, 128, %s32_s19, [#allocation6], %s751_s30, %s751_s30, %s752_s6  }
  0x15   :  { %s653_s11 = scalar_lea.hbm %s887_s0, 128 }
  0x16   :  { %p654_p8 = scmp.ne.s32.totalorder %s887_s0, %s653_s11  ;;  %p657_p9 = scmp.lt.u32.totalorder %s653_s11, %s887_s0 }
  0x18   :  { %p659_p10 = pnand %p657_p9, %p654_p8 }
  0x1a   :  { %662 = shalt.err (!%p659_p10)
}
  0x1b   :  { %s663_s16 = scalar_lea.vmem %s790_s21, 128  ;;  %p668_p12 = scmp.lt.s32.totalorder %s790_s21, %s790_s21 }
  0x1c   :  { %p664_p11 = scmp.ne.s32.totalorder %s790_s21, %s663_s16  ;;  %p669_p13 = scmp.lt.s32.totalorder %s663_s16, %s663_s16 }
  0x1e   :  { %p670_p0 = por %p669_p13, %p668_p12 }
  0x20   :  { %p671_p1 = pnand %p670_p0, %p664_p11 }
  0x22   :  { %674 = shalt.err (!%p671_p1)
}
  0x23   :  { %25 = dma.hbm_to_vmem [thread:$0]  %s887_s0, 128, %s790_s21, [#allocation3], %s751_s30, %s751_s30, %s752_s6  }
  0x24   :  { %s753_s18 = smov [#allocation7]   ;;  %s675_s23 = scalar_lea.hbm %s889_s2, 4096 }
  0x25   :  { %s43_s19 = sshll.u32 %s753_s18, 4  ;;  %p676_p2 = scmp.ne.s32.totalorder %s889_s2, %s675_s23  ;;  %s44_s19 = int_to_ptr.vmem [resolvable:$true] %s43_s19 }
  0x26   :  { %p679_p3 = scmp.lt.u32.totalorder %s675_s23, %s889_s2 }
  0x28   :  { %p681_p4 = pnand %p679_p3, %p676_p2 }
  0x2a   :  { %684 = shalt.err (!%p681_p4)
}
  0x2b   :  { %s685_s28 = scalar_lea.vmem %s44_s19, 4096  ;;  %p690_p6 = scmp.lt.s32.totalorder %s44_s19, %s44_s19 }
  0x2c   :  { %p686_p5 = scmp.ne.s32.totalorder %s44_s19, %s685_s28  ;;  %p691_p7 = scmp.lt.s32.totalorder %s685_s28, %s685_s28 }
  0x2e   :  { %p692_p8 = por %p691_p7, %p690_p6 }
  0x30   :  { %p693_p9 = pnand %p692_p8, %p686_p5 }
  0x32   :  { %696 = shalt.err (!%p693_p9)
}
  0x33   :  { %s754_s0 = smov 128   ;;  %s755_s21 = smov 8  }
  0x34   :  { %49 = dma.hbm_to_vmem [thread:$0]  %s889_s2, 4096, %s44_s19, [#allocation6], %s754_s0, %s754_s0, %s755_s21  }
  0x35   :  { %s756_s8 = smov [#allocation8]   ;;  %s697_s12 = scalar_lea.hbm %s890_s3, 1024 }
  0x36   :  { %s55_s9 = sshll.u32 %s756_s8, 4  ;;  %p698_p10 = scmp.ne.s32.totalorder %s890_s3, %s697_s12  ;;  %s56_s9 = int_to_ptr.vmem [resolvable:$true] %s55_s9 }
  0x37   :  { %p701_p11 = scmp.lt.u32.totalorder %s697_s12, %s890_s3 }
  0x39   :  { %p703_p12 = pnand %p701_p11, %p698_p10 }
  0x3b   :  { %706 = shalt.err (!%p703_p12)
}
  0x3c   :  { %s707_s1 = scalar_lea.vmem %s56_s9, 1024  ;;  %p712_p0 = scmp.lt.s32.totalorder %s56_s9, %s56_s9 }
  0x3d   :  { %p708_p13 = scmp.ne.s32.totalorder %s56_s9, %s707_s1  ;;  %p713_p1 = scmp.lt.s32.totalorder %s707_s1, %s707_s1 }
  0x3f   :  { %p714_p2 = por %p713_p1, %p712_p0 }
  0x41   :  { %p715_p3 = pnand %p714_p2, %p708_p13 }
  0x43   :  { %718 = shalt.err (!%p715_p3)
}
  0x44   :  { %61 = dma.hbm_to_vmem [thread:$0]  %s890_s3, 1024, %s56_s9, [#allocation9], %s751_s30, %s751_s30, %s752_s6  }
  0x45   :  { %741 = dma.done.wait [#allocation3], 128  }
  0x46   :  { %742 = vsyncadd [#allocation3], 4294967168 }
  0x47   :  { %743 = dma.done.wait [#allocation6], 4224  }
  0x48   :  { %744 = vsyncadd [#allocation6], 4294963072 }
  0x49   :  { %745 = dma.done.wait [#allocation9], 1024  }
  0x4a   :  { %746 = vsyncadd [#allocation9], 4294966272  ;;  %v757_v0 = vmov 0.0   ;;  %v569_v1 = vld [vmem:[#allocation7 + $0x4] ss:$8 sps:$4 sm:$0xff]   ;;  %v617_v15 = vld [vmem:[#allocation5] sm:$0xff]   ;;  %v127_v43 = vlaneseq }
  0x4b   :  { %538 = vmatprep.subr.bf16.mxu1 %v757_v0  ;;  %v571_v2 = vld [vmem:[#allocation7] ss:$8 sps:$4 sm:$0xff]   ;;  %297 = vmatprep.subr.bf16.mxu0 %v569_v1  ;;  %v572_v3 = vld [vmem:[#allocation7 + $0x14] ss:$8 sps:$4 sm:$0xff]   ;;  %v574_v4 = vld [vmem:[#allocation7 + $0x10] ss:$8 sps:$4 sm:$0xff]  }
  0x4c   :  { %298 = vmatpush1.bf16.msra.mxu0 %v571_v2  ;;  %v575_v5 = vld [vmem:[#allocation7 + $0x24] ss:$8 sps:$4 sm:$0xff]   ;;  %v577_v6 = vld [vmem:[#allocation7 + $0x20] ss:$8 sps:$4 sm:$0xff]   ;;  %v578_v7 = vld [vmem:[#allocation7 + $0x34] ss:$8 sps:$4 sm:$0xff]   ;;  %329 = vmatprep.mubr.bf16.mxu0 %v617_v15 }
  0x4d   :  { %299 = vmatprep.subr.bf16.mxu0 %v572_v3  ;;  %v580_v8 = vld [vmem:[#allocation7 + $0x30] ss:$8 sps:$4 sm:$0xff]   ;;  %v581_v9 = vld [vmem:[#allocation7 + $0x44] ss:$8 sps:$4 sm:$0xff]   ;;  %v583_v10 = vld [vmem:[#allocation7 + $0x40] ss:$8 sps:$4 sm:$0xff]  }
  0x4e   :  { %v584_v11 = vld [vmem:[#allocation7 + $0x54] ss:$8 sps:$4 sm:$0xff]   ;;  %v586_v12 = vld [vmem:[#allocation7 + $0x50] ss:$8 sps:$4 sm:$0xff]   ;;  %v587_v13 = vld [vmem:[#allocation7 + $0x64] ss:$8 sps:$4 sm:$0xff]  }
  0x4f   :  { %v589_v14 = vld [vmem:[#allocation7 + $0x60] ss:$8 sps:$4 sm:$0xff]   ;;  %v590_v16 = vld [vmem:[#allocation7 + $0x74] ss:$8 sps:$4 sm:$0xff]   ;;  %v592_v19 = vld [vmem:[#allocation7 + $0x70] ss:$8 sps:$4 sm:$0xff]  }
  0x50   :  { %300 = vmatpush1.bf16.msra.mxu0 %v574_v4  ;;  %v619_v17 = vld [vmem:[#allocation8] sm:$0xff]   ;;  %v620_v18 = vld [vmem:[#allocation8 + $0x8] sm:$0xff]   ;;  %v621_v21 = vld [vmem:[#allocation8 + $0x10] sm:$0xff]   ;;  %vm758_vm0 = vmmov 0   ;;  %v128_v44 = vshrl.u32 %v127_v43, 7  ;;  %s759_s19 = smov [#allocation10]  }
  0x51   :  { %301 = vmatprep.subr.bf16.mxu0 %v575_v5  ;;  %539 = vmatpush3.bf16.msra.mxu1 %v619_v17  ;;  %v593_v20 = vld [vmem:[#allocation7 + $0x84] ss:$8 sps:$4 sm:$0xff]   ;;  %v595_v22 = vld [vmem:[#allocation7 + $0x80] ss:$8 sps:$4 sm:$0xff]   ;;  %v596_v23 = vld [vmem:[#allocation7 + $0x94] ss:$8 sps:$4 sm:$0xff]  }
  0x52   :  { %540 = vmatprep.subr.bf16.mxu1 %v757_v0  ;;  %v622_v24 = vld [vmem:[#allocation8 + $0x18] sm:$0xff]   ;;  %v599_v26 = vld [vmem:[#allocation7 + $0xa4] ss:$8 sps:$4 sm:$0xff]   ;;  %v601_v28 = vld [vmem:[#allocation7 + $0xa0] ss:$8 sps:$4 sm:$0xff]   ;;  %554 = vmatprep.mubr.msk.bf16.mxu1 %vm758_vm0, %v757_v0  ;;  %v133_v45 = vsub.s32 1, %v128_v44 }
  0x53   :  { %v598_v25 = vld [vmem:[#allocation7 + $0x90] ss:$8 sps:$4 sm:$0xff]   ;;  %v623_v27 = vld [vmem:[#allocation8 + $0x20] sm:$0xff]   ;;  %v602_v29 = vld [vmem:[#allocation7 + $0xb4] ss:$8 sps:$4 sm:$0xff]   ;;  %v129_v57 = vsub.s32 0, %v128_v44 }
  0x54   :  { %302 = vmatpush1.bf16.msra.mxu0 %v577_v6  ;;  %v624_v30 = vld [vmem:[#allocation8 + $0x28] sm:$0xff]   ;;  %v604_v31 = vld [vmem:[#allocation7 + $0xb0] ss:$8 sps:$4 sm:$0xff]   ;;  %v608_v34 = vld [vmem:[#allocation7 + $0xd4] ss:$8 sps:$4 sm:$0xff]   ;;  %s472_s20 = sshll.u32 %s759_s19, 4  ;;  %s473_s20 = int_to_ptr.vmem [resolvable:$true] %s472_s20 }
  0x55   :  { %303 = vmatprep.subr.bf16.mxu0 %v578_v7  ;;  %541 = vmatpush3.bf16.msra.mxu1 %v620_v18  ;;  %v605_v32 = vld [vmem:[#allocation7 + $0xc4] ss:$8 sps:$4 sm:$0xff]   ;;  %v607_v33 = vld [vmem:[#allocation7 + $0xc0] ss:$8 sps:$4 sm:$0xff]   ;;  %v610_v35 = vld [vmem:[#allocation7 + $0xd0] ss:$8 sps:$4 sm:$0xff]   ;;  %p724_p5 = scmp.lt.s32.totalorder %s473_s20, %s473_s20 }
  0x56   :  { %542 = vmatprep.subr.bf16.mxu1 %v757_v0  ;;  %v611_v36 = vld [vmem:[#allocation7 + $0xe4] ss:$8 sps:$4 sm:$0xff]   ;;  %v613_v37 = vld [vmem:[#allocation7 + $0xe0] ss:$8 sps:$4 sm:$0xff]   ;;  %v614_v38 = vld [vmem:[#allocation7 + $0xf4] ss:$8 sps:$4 sm:$0xff]  }
  0x57   :  { %v616_v39 = vld [vmem:[#allocation7 + $0xf0] ss:$8 sps:$4 sm:$0xff]   ;;  %s719_s22 = scalar_lea.vmem %s473_s20, 256 }
  0x58   :  { %304 = vmatpush1.bf16.msra.mxu0 %v580_v8  ;;  %v618_v40 = vld [vmem:[#allocation2] sm:$0xff]   ;;  %v626_v42 = vld [vmem:[#allocation8 + $0x38] sm:$0xff]   ;;  %p720_p4 = scmp.ne.s32.totalorder %s473_s20, %s719_s22  ;;  %p725_p6 = scmp.lt.s32.totalorder %s719_s22, %s719_s22 }
  0x59   :  { %305 = vmatprep.subr.bf16.mxu0 %v581_v9  ;;  %543 = vmatpush3.bf16.msra.mxu1 %v621_v21  ;;  %v625_v41 = vld [vmem:[#allocation8 + $0x30] sm:$0xff]  }
  0x5a   :  { %544 = vmatprep.subr.bf16.mxu1 %v757_v0  ;;  %v125_v46 = vld [vmem:[%s891_s4] sm:$0x3]  ;;  %v520_v2 = vld [vmem:[%s891_s4 + $0x2] ss:$0 sm:$0xff]  ;;  %p726_p7 = por %p725_p6, %p724_p5 }
  0x5b   :  { %v134_v47 = vrot.slane %v125_v46, %v133_v45  ;;  %v130_v58 = vrot.slane %v125_v46, %v129_v57 }
  0x5c   :  { %306 = vmatpush1.bf16.msra.mxu0 %v583_v10  ;;  %p727_p8 = pnand %p726_p7, %p720_p4 }
  0x5d   :  { %307 = vmatprep.subr.bf16.mxu0 %v584_v11  ;;  %545 = vmatpush3.bf16.msra.mxu1 %v622_v24 }
  0x5e   :  { %546 = vmatprep.subr.bf16.mxu1 %v757_v0 }
  0x60   :  { %308 = vmatpush1.bf16.msra.mxu0 %v586_v12 }
  0x61   :  { %309 = vmatprep.subr.bf16.mxu0 %v587_v13  ;;  %547 = vmatpush3.bf16.msra.mxu1 %v623_v27 }
  0x62   :  { %548 = vmatprep.subr.bf16.mxu1 %v757_v0 }
  0x64   :  { %310 = vmatpush1.bf16.msra.mxu0 %v589_v14 }
  0x65   :  { %311 = vmatprep.subr.bf16.mxu0 %v590_v16  ;;  %549 = vmatpush3.bf16.msra.mxu1 %v624_v30 }
  0x66   :  { %550 = vmatprep.subr.bf16.mxu1 %v757_v0 }
  0x68   :  { %312 = vmatpush1.bf16.msra.mxu0 %v592_v19 }
  0x69   :  { %313 = vmatprep.subr.bf16.mxu0 %v593_v20  ;;  %551 = vmatpush3.bf16.msra.mxu1 %v625_v41 }
  0x6a   :  { %552 = vmatprep.subr.bf16.mxu1 %v757_v0 }
  0x6c   :  { %314 = vmatpush1.bf16.msra.mxu0 %v595_v22 }
  0x6d   :  { %315 = vmatprep.subr.bf16.mxu0 %v596_v23  ;;  %553 = vmatpush3.bf16.msra.mxu1 %v626_v42 }
  0x70   :  { %316 = vmatpush1.bf16.msra.mxu0 %v598_v25 }
  0x71   :  { %317 = vmatprep.subr.bf16.mxu0 %v599_v26 }
  0x74   :  { %318 = vmatpush1.bf16.msra.mxu0 %v601_v28 }
  0x75   :  { %319 = vmatprep.subr.bf16.mxu0 %v602_v29 }
  0x78   :  { %320 = vmatpush1.bf16.msra.mxu0 %v604_v31 }
  0x79   :  { %321 = vmatprep.subr.bf16.mxu0 %v605_v32 }
  0x7c   :  { %322 = vmatpush1.bf16.msra.mxu0 %v607_v33 }
  0x7d   :  { %323 = vmatprep.subr.bf16.mxu0 %v608_v34 }
  0x80   :  { %324 = vmatpush1.bf16.msra.mxu0 %v610_v35 }
  0x81   :  { %325 = vmatprep.subr.bf16.mxu0 %v611_v36 }
  0x84   :  { %326 = vmatpush1.bf16.msra.mxu0 %v613_v37 }
  0x85   :  { %327 = vmatprep.subr.bf16.mxu0 %v614_v38 }
  0x88   :  { %328 = vmatpush1.bf16.msra.mxu0 %v616_v39 }
  0x8b   :  { %330 = vmatmul.mubr.bf16.vlgmr.msra.gmra.mrb[0].mxu0 %v618_v40 }
 0x15e   :  { %v331_v48 = vpop.f32.mrb[0].mxu0 }
 0x15f   :  { %v333_v49 = vpop.f32.mrb[1].mxu0  ;;  %v332_v59 = vadd.f32 %v331_v48, %v130_v58 }
 0x160   :  { %v334_v50 = vadd.f32 %v333_v49, %v134_v47  ;;  %v335_v51 = vpop.f32.mrb[2].mxu0 }
 0x161   :  { %v337_v52 = vpop.f32.mrb[3].mxu0  ;;  %v336_v60 = vadd.f32 %v335_v51, %v130_v58  ;;  %v342_v61 = vmul.f32 0.5, %v332_v59 }
 0x162   :  { %v338_v53 = vadd.f32 %v337_v52, %v134_v47  ;;  %v340_v54 = vmax.f32 %v334_v50, 0.0 }
 0x163   :  { %v343_v62 = vmul.f32 0.5, %v336_v60  ;;  %627 = vtanh.f32 %v342_v61 }
 0x164   :  { %v341_v55 = vmax.f32 %v338_v53, 0.0 }
 0x165   :  { %629 = vtanh.f32 %v343_v62 }
 0x166   :  { %v350_v56 = vpack.c.bf16 %v341_v55, %v340_v54 }
 0x168   :  { %555 = vmatmul.mubr.bf16.vlgmr.msra.gmra.mrb[0].mxu1 %v350_v56 }
 0x16d   :  { %v628_v63 = vpop.eup %627 }
 0x16e   :  { %v346_v1 = vadd.f32 1.0, %v628_v63 }
 0x16f   :  { %v630_v0 = vpop.eup %629 }
 0x170   :  { %v347_v3 = vadd.f32 1.0, %v630_v0  ;;  %v348_v5 = vmul.f32 0.5, %v346_v1 }
 0x172   :  { %v349_v10 = vmul.f32 0.5, %v347_v3 }
 0x23b   :  { %v456_v4 = vpop.f32.mrb[0].mxu1 }
 0x23c   :  { %v457_v6 = vadd.f32 %v520_v2, %v456_v4  ;;  %v556_v7 = vpop.f32.mrb[1].mxu1 }
 0x23d   :  { %v459_v8 = vpop.f32.mrb[2].mxu1 }
 0x23e   :  { %v463_v9 = vmul.f32 %v457_v6, %v348_v5  ;;  %v460_v11 = vadd.f32 %v520_v2, %v459_v8  ;;  %v557_v12 = vpop.f32.mrb[3].mxu1 }
 0x240   :  { %465 = vst [vmem:[#allocation10] sm:$0xff] %v463_v9  ;;  %v464_v13 = vmul.f32 %v460_v11, %v349_v10 }
 0x242   :  { %466 = vst [vmem:[#allocation10 + $0x8] sm:$0xff] %v464_v13 }
 0x243   :  { %730 = shalt.err (!%p727_p8)
}
 0x244   :  { %s731_s24 = scalar_lea.hbm %s892_s5, 256 }
 0x245   :  { %p732_p9 = scmp.ne.s32.totalorder %s892_s5, %s731_s24  ;;  %p735_p10 = scmp.lt.u32.totalorder %s731_s24, %s892_s5 }
 0x247   :  { %p737_p11 = pnand %p735_p10, %p732_p9 }
 0x249   :  { %740 = shalt.err (!%p737_p11)
}
 0x24a   :  { %478 = dma.vmem_to_hbm [thread:$0]  %s473_s20, 256, %s892_s5, [#allocation4], %s754_s0, %s754_s0, %s755_s21  }
 0x24b   :  { %747 = dma.done.wait [#allocation4], 256  }
 0x24c   :  { %748 = vsyncadd [#allocation4], 4294967040 }
 0x24d   :  { %482 = vsyncpa [#allocation3], 1 }
 0x24e   :  { %483 = vsyncpa [#allocation6], 1 }
 0x24f   :  { %484 = vsyncpa [#allocation9], 1 }
 0x250   :  { %485 = vsyncpa [#allocation4], 1 }

</bundles_post_ra>
